<compile_context>
chip_gen: v6e
topology: v6e:2x2x1
jax: 0.10.0
libtpu: 0.0.40
codegen_flags: <defaults>
</compile_context>

<pallas_src>
import jax
import jax.numpy as jnp
from jax.experimental import pallas as pl
from jax.experimental.pallas import tpu as pltpu

_LANE = 128
_MIB = 1024 * 1024


def _round_up(x, m):
    return (x + m - 1) // m * m


def _choose_batch_tile(batch, max_tile=512):
    """Rows per grid step.

    Large tiles amortize the ~0.35us per-grid-step overhead (measured 29% -> 85% of HBM
    roofline going 128 -> 512 rows); for batch > 128 we guarantee >= 2 grid steps so the
    "parallel" batch axis can be sharded across both v7x TensorCores.
    """
    if batch <= 128:
        return max(8, _round_up(batch, 8))
    return min(max_tile, _round_up(pl.cdiv(batch, 2), 128))


def _vmem_limit_bytes(required_bytes):
    """Chip-aware VMEM budget: required + headroom, clamped under physical capacity."""
    try:
        cap = pltpu.get_tpu_info().vmem_capacity_bytes
    except Exception:
        cap = 64 * _MIB  # conservative (v7x-class) if the query is unavailable
    # Leave ~24 MiB for Mosaic internal scratch / the second core's working set:
    # -> ~40 MiB ceiling on v7x (64 MiB physical), ~104 MiB on v5e/v6e (128 MiB).
    ceiling = max(cap - 24 * _MIB, 32 * _MIB)
    if required_bytes > ceiling:
        # TODO(synk): add a weight-streaming path (K / layer grid axis + f32 VMEM
        # accumulator with pl.when init/finalize) instead of keeping every layer resident.
        raise ValueError(
            f"ForwardDynamics Pallas kernel needs ~{required_bytes} B of VMEM but only "
            f"{ceiling} B are budgetable on this chip; shrink the layers or add the "
            "weight-streaming fallback.")
    budget = int(1.5 * required_bytes) + 4 * _MIB
    return int(min(max(budget, 16 * _MIB), ceiling))


def _make_mlp_kernel(n_linear):
    """Fused [Linear -> ReLU -> Dropout(identity)]* -> Linear kernel body.

    Ref order: x_tile, (w0, b0), (w1, b1), ..., out_tile.
    Weights are bf16 (in, out_pad); biases are f32 (1, out_pad); accumulation is f32.
    """

    def kernel(*refs):
        x_ref = refs[0]
        o_ref = refs[-1]
        wb_refs = refs[1:-1]

        # x streams from HBM in its native dtype; feed the MXU in bf16.
        h = x_ref[...].astype(jnp.bfloat16)                  # (TB, in) bf16
        for i in range(n_linear):
            w = wb_refs[2 * i][...]                          # (in, out_pad) bf16
            b = wb_refs[2 * i + 1][...]                      # (1, out_pad) f32
            acc = jnp.dot(h, w, preferred_element_type=jnp.float32) + b
            if i < n_linear - 1:
                acc = jnp.maximum(acc, 0.0)                  # ReLU in f32 (VPU)
                # nn.Dropout(p) -> identity at inference time.
                h = acc.astype(jnp.bfloat16)                 # bf16 feed for next MXU pass
            else:
                h = acc
        o_ref[...] = h.astype(o_ref.dtype)

    return kernel


def prepare_forward_dynamics_params(weights, biases, param_dtype=jnp.bfloat16,
                                    lane_multiple=_LANE):
    """One-time parameter prep (call at init, NOT per forward).

    Transposes PyTorch-convention (out, in) weights to (in, out), zero-pads the output
    feature dims to `lane_multiple` lanes (use 256 on v6e/v7x when hidden dims exceed 128
    to feed full-width 256x256 MXU passes), casts weights to bf16 and lifts biases to
    (1, out_pad) f32.  Layer 0 keeps its logical contraction dim so x can be streamed
    straight from HBM without a padded copy.
    Returns (prepped_params, logical_dims).
    """
    assert len(weights) == len(biases)
    prepped, dims = [], []
    for i, (w, b) in enumerate(zip(weights, biases)):
        w = jnp.asarray(w, jnp.float32)                      # (out, in) torch convention
        b = jnp.asarray(b, jnp.float32)
        out_f, in_f = w.shape
        in_p = in_f if i == 0 else _round_up(in_f, lane_multiple)
        out_p = _round_up(out_f, lane_multiple)
        w_t = jnp.zeros((in_p, out_p), jnp.float32).at[:in_f, :out_f].set(w.T)
        b_p = jnp.zeros((1, out_p), jnp.float32).at[0, :out_f].set(b)
        prepped.append((w_t.astype(param_dtype), b_p))
        dims.append((in_f, out_f))
    return prepped, dims


_SINGLE_BUFFER_WEIGHTS_OK = None  # tri-state probe: None = untested, True/False = result


def forward_dynamics_pallas(x, prepped_params, dims, *, batch_tile=None,
                            out_dtype=jnp.float32, single_buffer_weights=True):
    """Runs the ForwardDynamics MLP forward pass (eval mode) in one fused Pallas kernel.

    Args:
      x:               (batch, input_size) f32 (or bf16); streamed straight from HBM.
      prepped_params:  output of prepare_forward_dynamics_params (kept resident in VMEM).
      dims:            logical (in, out) per layer.
      batch_tile:      rows per grid step; None -> derived from batch (<= 512).
      out_dtype:       jnp.float32 (default, matches PyTorch) or jnp.bfloat16 to halve
                       output writeback bytes when the consumer tolerates it.
      single_buffer_weights: request pl.Buffered(1) for the resident params.
    Returns:
      (batch, output_size) array of out_dtype.
    """
    global _SINGLE_BUFFER_WEIGHTS_OK

    n_linear = len(prepped_params)
    batch, in_features = x.shape
    assert dims[0][0] == in_features, (dims[0], in_features)
    assert prepped_params[0][0].shape[0] == in_features
    for l in range(1, n_linear):
        assert prepped_params[l][0].shape[0] == prepped_params[l - 1][0].shape[1]
    out_features = dims[-1][1]
    out_pad = prepped_params[-1][0].shape[1]

    tb = _choose_batch_tile(batch) if batch_tile is None else batch_tile
    grid = (pl.cdiv(batch, tb),)

    # --- VMEM accounting ------------------------------------------------------------
    resident = sum(w.size * w.dtype.itemsize + b.size * b.dtype.itemsize
                   for w, b in prepped_params)
    max_pad = max([in_features] + [w.shape[1] for w, _ in prepped_params])
    out_itemsize = jnp.dtype(out_dtype).itemsize
    streamed = 2 * (tb * in_features * x.dtype.itemsize + tb * out_pad * out_itemsize)
    scratch = 3 * tb * max_pad * 4      # f32 accumulator + bf16 intermediates headroom

    # --- advisory cost estimate so XLA schedules neighbors around the kernel ---------
    cost = pl.CostEstimate(
        flops=2 * batch * sum(w.shape[0] * w.shape[1] for w, _ in prepped_params),
        transcendentals=0,
        bytes_accessed=(batch * in_features * x.dtype.itemsize
                        + batch * out_pad * out_itemsize + resident),
    )

    operands = [x]
    for w_p, b_p in prepped_params:
        operands.append(w_p)
        operands.append(b_p)
    out_spec = pl.BlockSpec((tb, out_pad), lambda i: (i, 0))

    def run(weight_buffers):
        # Constant index_map keeps params resident; Buffered(1) drops their 2nd buffer.
        wkw = {"pipeline_mode": pl.Buffered(1)} if weight_buffers == 1 else {}
        in_specs = [pl.BlockSpec((tb, in_features), lambda i: (i, 0))]
        for w_p, b_p in prepped_params:
            in_specs.append(pl.BlockSpec(w_p.shape, lambda i: (0, 0), **wkw))
            in_specs.append(pl.BlockSpec(b_p.shape, lambda i: (0, 0), **wkw))
        vmem_limit = _vmem_limit_bytes(weight_buffers * resident + streamed + scratch)
        return pl.pallas_call(
            _make_mlp_kernel(n_linear),
            out_shape=jax.ShapeDtypeStruct((batch, out_pad), out_dtype),
            grid=grid,
            in_specs=in_specs,
            out_specs=out_spec,
            compiler_params=pltpu.CompilerParams(
                dimension_semantics=("parallel",),
                vmem_limit_bytes=vmem_limit,
            ),
            cost_estimate=cost,
        )(*operands)

    if single_buffer_weights and _SINGLE_BUFFER_WEIGHTS_OK is not False:
        try:
            probe = _SINGLE_BUFFER_WEIGHTS_OK is None
            out_padded = run(1)
            if probe:
                jax.block_until_ready(out_padded)
            _SINGLE_BUFFER_WEIGHTS_OK = True
        except Exception:
            # Graceful fallback: default (double) buffering of resident params.
            _SINGLE_BUFFER_WEIGHTS_OK = False
            out_padded = run(2)
    else:
        out_padded = run(2)

    # Lane slice back to the logical width; under a caller's jit this fuses downstream.
    return out_padded[:, :out_features] if out_features != out_pad else out_padded


def init_forward_dynamics_params(key, input_size, hidden_sizes, output_size):
    """Deterministic init mirroring nn.Linear's default U(-1/sqrt(fan_in), +1/sqrt(fan_in))."""
    sizes = [input_size] + list(hidden_sizes) + [output_size]
    weights, biases = [], []
    for i in range(len(sizes) - 1):
        fan_in, fan_out = sizes[i], sizes[i + 1]
        key, kw, kb = jax.random.split(key, 3)
        bound = 1.0 / jnp.sqrt(jnp.float32(fan_in))
        # PyTorch weight shape convention: (out_features, in_features)
        w = jax.random.uniform(kw, (fan_out, fan_in), jnp.float32, -bound, bound)
        b = jax.random.uniform(kb, (fan_out,), jnp.float32, -bound, bound)
        weights.append(w)
        biases.append(b)
    return weights, biases


def forward_dynamics_ref_f32(x, weights, biases):
    """Pure-f32 JAX reference of the PyTorch forward pass (eval mode)."""
    h = jnp.asarray(x, jnp.float32)
    n = len(weights)
    for i, (w, b) in enumerate(zip(weights, biases)):
        h = h @ jnp.asarray(w, jnp.float32).T + jnp.asarray(b, jnp.float32)
        if i < n - 1:
            h = jnp.maximum(h, 0.0)
    return h


def forward_dynamics_ref_bf16(x, weights, biases):
    """Reference with the kernel's numerics contract: bf16 operands, f32 accumulation."""
    h = jnp.asarray(x, jnp.float32).astype(jnp.bfloat16)
    n = len(weights)
    for i, (w, b) in enumerate(zip(weights, biases)):
        w_t = jnp.asarray(w, jnp.float32).T.astype(jnp.bfloat16)
        acc = jnp.dot(h, w_t, preferred_element_type=jnp.float32) + jnp.asarray(b, jnp.float32)
        if i < n - 1:
            acc = jnp.maximum(acc, 0.0)
            h = acc.astype(jnp.bfloat16)
        else:
            h = acc
    return h


if __name__ == "__main__":
    # Small, module-consistent shapes.
    batch = 16
    input_size = 32
    hidden_sizes = [64, 32]
    output_size = 16

    key = jax.random.PRNGKey(0)
    key, kx = jax.random.split(key)
    x = jax.random.normal(kx, (batch, input_size), jnp.float32)

    weights, biases = init_forward_dynamics_params(
        key, input_size, hidden_sizes, output_size
    )
    # Params are prepped ONCE (transpose / pad / bf16 cast) and reused across calls.
    prepped, dims = prepare_forward_dynamics_params(weights, biases)

    out = jax.block_until_ready(forward_dynamics_pallas(x, prepped, dims))
    assert out.shape == (batch, output_size), out.shape

    ref_bf16 = forward_dynamics_ref_bf16(x, weights, biases)
    ref_f32 = forward_dynamics_ref_f32(x, weights, biases)
    assert jnp.allclose(out, ref_bf16, atol=1e-4, rtol=1e-4), "mismatch vs bf16 reference"
    assert jnp.allclose(out, ref_f32, atol=3e-2, rtol=3e-2), "mismatch vs f32 reference"

    # Larger, non-tile-aligned batch: exercises >=2 grid steps (v7x megacore sharding),
    # a partial last block, and the no-copy x streaming path.
    big_batch = 500
    key, kb = jax.random.split(key)
    xb = jax.random.normal(kb, (big_batch, input_size), jnp.float32)
    out_b = jax.block_until_ready(forward_dynamics_pallas(xb, prepped, dims))
    assert out_b.shape == (big_batch, output_size), out_b.shape
    assert jnp.allclose(out_b, forward_dynamics_ref_bf16(xb, weights, biases),
                        atol=1e-4, rtol=1e-4), "mismatch vs bf16 reference (big batch)"

    print("KERNEL_OK")
</pallas_src>

<mosaic_0001>
module attributes {stable_mosaic.version = 11 : i64} {
  func.func @kernel(%arg0: i32, %arg1: memref<16x32xf32, #tpu.memory_space<vmem>>, %arg2: memref<32x128xbf16, #tpu.memory_space<vmem>>, %arg3: memref<1x128xf32, #tpu.memory_space<vmem>>, %arg4: memref<128x128xbf16, #tpu.memory_space<vmem>>, %arg5: memref<1x128xf32, #tpu.memory_space<vmem>>, %arg6: memref<128x128xbf16, #tpu.memory_space<vmem>>, %arg7: memref<1x128xf32, #tpu.memory_space<vmem>>, %arg8: memref<16x128xf32, #tpu.memory_space<vmem>>) attributes {dimension_semantics = [#tpu.dimension_semantics<parallel>], iteration_bounds = array<i64: 1>, scalar_prefetch = 0 : i64, scratch_operands = 0 : i64, tpu.core_type = #tpu.core_type<tc>, window_params = [{transform_indices = @transform_0, window_bounds = array<i64: 16, 32>}, {pipeline_mode = #tpu.pipeline_mode<synchronous>, transform_indices = @transform_1, window_bounds = array<i64: 32, 128>}, {pipeline_mode = #tpu.pipeline_mode<synchronous>, transform_indices = @transform_2, window_bounds = array<i64: 1, 128>}, {pipeline_mode = #tpu.pipeline_mode<synchronous>, transform_indices = @transform_3, window_bounds = array<i64: 128, 128>}, {pipeline_mode = #tpu.pipeline_mode<synchronous>, transform_indices = @transform_4, window_bounds = array<i64: 1, 128>}, {pipeline_mode = #tpu.pipeline_mode<synchronous>, transform_indices = @transform_5, window_bounds = array<i64: 128, 128>}, {pipeline_mode = #tpu.pipeline_mode<synchronous>, transform_indices = @transform_6, window_bounds = array<i64: 1, 128>}, {transform_indices = @transform_7, window_bounds = array<i64: 16, 128>}]} {
    %c0 = arith.constant 0 : index
    %c0_0 = arith.constant 0 : index
    %0 = vector.load %arg1[%c0, %c0_0] : memref<16x32xf32, #tpu.memory_space<vmem>>, vector<16x32xf32>
    %1 = arith.truncf %0 : vector<16x32xf32> to vector<16x32xbf16>
    %c0_1 = arith.constant 0 : index
    %c0_2 = arith.constant 0 : index
    %2 = vector.load %arg2[%c0_1, %c0_2] : memref<32x128xbf16, #tpu.memory_space<vmem>>, vector<32x128xbf16>
    %c0_3 = arith.constant 0 : index
    %c0_4 = arith.constant 0 : index
    %3 = vector.load %arg3[%c0_3, %c0_4] : memref<1x128xf32, #tpu.memory_space<vmem>>, vector<1x128xf32>
    %cst = arith.constant dense<0.000000e+00> : vector<16x128xf32>
    %4 = tpu.matmul %1, %2, %cst {dimension_numbers = #tpu.dot_dimension_numbers<[1], [0], [0], [1], [0, 0, 1, 1], [], []>} : vector<16x32xbf16>, vector<32x128xbf16>, vector<16x128xf32> -> vector<16x128xf32>
    %5 = vector.broadcast %3 : vector<1x128xf32> to vector<16x128xf32>
    %6 = arith.addf %4, %5 : vector<16x128xf32>
    %cst_5 = arith.constant 0.000000e+00 : f32
    %7 = vector.broadcast %cst_5 : f32 to vector<16x128xf32>
    %8 = arith.maximumf %6, %7 : vector<16x128xf32>
    %9 = arith.truncf %8 : vector<16x128xf32> to vector<16x128xbf16>
    %c0_6 = arith.constant 0 : index
    %c0_7 = arith.constant 0 : index
    %10 = vector.load %arg4[%c0_6, %c0_7] : memref<128x128xbf16, #tpu.memory_space<vmem>>, vector<128x128xbf16>
    %c0_8 = arith.constant 0 : index
    %c0_9 = arith.constant 0 : index
    %11 = vector.load %arg5[%c0_8, %c0_9] : memref<1x128xf32, #tpu.memory_space<vmem>>, vector<1x128xf32>
    %cst_10 = arith.constant dense<0.000000e+00> : vector<16x128xf32>
    %12 = tpu.matmul %9, %10, %cst_10 {dimension_numbers = #tpu.dot_dimension_numbers<[1], [0], [0], [1], [0, 0, 1, 1], [], []>} : vector<16x128xbf16>, vector<128x128xbf16>, vector<16x128xf32> -> vector<16x128xf32>
    %13 = vector.broadcast %11 : vector<1x128xf32> to vector<16x128xf32>
    %14 = arith.addf %12, %13 : vector<16x128xf32>
    %cst_11 = arith.constant 0.000000e+00 : f32
    %15 = vector.broadcast %cst_11 : f32 to vector<16x128xf32>
    %16 = arith.maximumf %14, %15 : vector<16x128xf32>
    %17 = arith.truncf %16 : vector<16x128xf32> to vector<16x128xbf16>
    %c0_12 = arith.constant 0 : index
    %c0_13 = arith.constant 0 : index
    %18 = vector.load %arg6[%c0_12, %c0_13] : memref<128x128xbf16, #tpu.memory_space<vmem>>, vector<128x128xbf16>
    %c0_14 = arith.constant 0 : index
    %c0_15 = arith.constant 0 : index
    %19 = vector.load %arg7[%c0_14, %c0_15] : memref<1x128xf32, #tpu.memory_space<vmem>>, vector<1x128xf32>
    %cst_16 = arith.constant dense<0.000000e+00> : vector<16x128xf32>
    %20 = tpu.matmul %17, %18, %cst_16 {dimension_numbers = #tpu.dot_dimension_numbers<[1], [0], [0], [1], [0, 0, 1, 1], [], []>} : vector<16x128xbf16>, vector<128x128xbf16>, vector<16x128xf32> -> vector<16x128xf32>
    %21 = vector.broadcast %19 : vector<1x128xf32> to vector<16x128xf32>
    %22 = arith.addf %20, %21 : vector<16x128xf32>
    %c0_17 = arith.constant 0 : index
    %c0_18 = arith.constant 0 : index
    %23 = vector.load %arg8[%c0_17, %c0_18] : memref<16x128xf32, #tpu.memory_space<vmem>>, vector<16x128xf32>
    tpu.vector_store %arg8[%c0_17, %c0_18], %22 {strides = array<i32>} : memref<16x128xf32, #tpu.memory_space<vmem>>, vector<16x128xf32>,
    return
  }
  func.func @transform_0(%arg0: i32) -> (i32, i32) {
    %c0_i32 = arith.constant 0 : i32
    %c0_i32_0 = arith.constant 0 : i32
    return %arg0, %c0_i32 : i32, i32
  }
  func.func @transform_1(%arg0: i32) -> (i32, i32) {
    %c0_i32 = arith.constant 0 : i32
    %c0_i32_0 = arith.constant 0 : i32
    %c0_i32_1 = arith.constant 0 : i32
    return %c0_i32, %c0_i32_0 : i32, i32
  }
  func.func @transform_2(%arg0: i32) -> (i32, i32) {
    %c0_i32 = arith.constant 0 : i32
    %c0_i32_0 = arith.constant 0 : i32
    %c0_i32_1 = arith.constant 0 : i32
    return %c0_i32, %c0_i32_0 : i32, i32
  }
  func.func @transform_3(%arg0: i32) -> (i32, i32) {
    %c0_i32 = arith.constant 0 : i32
    %c0_i32_0 = arith.constant 0 : i32
    %c0_i32_1 = arith.constant 0 : i32
    return %c0_i32, %c0_i32_0 : i32, i32
  }
  func.func @transform_4(%arg0: i32) -> (i32, i32) {
    %c0_i32 = arith.constant 0 : i32
    %c0_i32_0 = arith.constant 0 : i32
    %c0_i32_1 = arith.constant 0 : i32
    return %c0_i32, %c0_i32_0 : i32, i32
  }
  func.func @transform_5(%arg0: i32) -> (i32, i32) {
    %c0_i32 = arith.constant 0 : i32
    %c0_i32_0 = arith.constant 0 : i32
    %c0_i32_1 = arith.constant 0 : i32
    return %c0_i32, %c0_i32_0 : i32, i32
  }
  func.func @transform_6(%arg0: i32) -> (i32, i32) {
    %c0_i32 = arith.constant 0 : i32
    %c0_i32_0 = arith.constant 0 : i32
    %c0_i32_1 = arith.constant 0 : i32
    return %c0_i32, %c0_i32_0 : i32, i32
  }
  func.func @transform_7(%arg0: i32) -> (i32, i32) {
    %c0_i32 = arith.constant 0 : i32
    %c0_i32_0 = arith.constant 0 : i32
    return %arg0, %c0_i32 : i32, i32
  }
}

module attributes {stable_mosaic.version = 11 : i64} {
  func.func @kernel(%arg0: i32, %arg1: memref<16x32xf32, #tpu.memory_space<vmem>>, %arg2: memref<32x128xbf16, #tpu.memory_space<vmem>>, %arg3: memref<1x128xf32, #tpu.memory_space<vmem>>, %arg4: memref<128x128xbf16, #tpu.memory_space<vmem>>, %arg5: memref<1x128xf32, #tpu.memory_space<vmem>>, %arg6: memref<128x128xbf16, #tpu.memory_space<vmem>>, %arg7: memref<1x128xf32, #tpu.memory_space<vmem>>, %arg8: memref<16x128xf32, #tpu.memory_space<vmem>>) attributes {dimension_semantics = [#tpu.dimension_semantics<parallel>], iteration_bounds = array<i64: 1>, scalar_prefetch = 0 : i64, scratch_operands = 0 : i64, tpu.core_type = #tpu.core_type<tc>, window_params = [{transform_indices = @transform_0, window_bounds = array<i64: 16, 32>}, {pipeline_mode = #tpu.pipeline_mode<synchronous>, transform_indices = @transform_1, window_bounds = array<i64: 32, 128>}, {pipeline_mode = #tpu.pipeline_mode<synchronous>, transform_indices = @transform_2, window_bounds = array<i64: 1, 128>}, {pipeline_mode = #tpu.pipeline_mode<synchronous>, transform_indices = @transform_3, window_bounds = array<i64: 128, 128>}, {pipeline_mode = #tpu.pipeline_mode<synchronous>, transform_indices = @transform_4, window_bounds = array<i64: 1, 128>}, {pipeline_mode = #tpu.pipeline_mode<synchronous>, transform_indices = @transform_5, window_bounds = array<i64: 128, 128>}, {pipeline_mode = #tpu.pipeline_mode<synchronous>, transform_indices = @transform_6, window_bounds = array<i64: 1, 128>}, {transform_indices = @transform_7, window_bounds = array<i64: 16, 128>}]} {
    %c0 = arith.constant 0 : index
    %c0_0 = arith.constant 0 : index
    %0 = vector.load %arg1[%c0, %c0_0] : memref<16x32xf32, #tpu.memory_space<vmem>>, vector<16x32xf32>
    %1 = arith.truncf %0 : vector<16x32xf32> to vector<16x32xbf16>
    %c0_1 = arith.constant 0 : index
    %c0_2 = arith.constant 0 : index
    %2 = vector.load %arg2[%c0_1, %c0_2] : memref<32x128xbf16, #tpu.memory_space<vmem>>, vector<32x128xbf16>
    %c0_3 = arith.constant 0 : index
    %c0_4 = arith.constant 0 : index
    %3 = vector.load %arg3[%c0_3, %c0_4] : memref<1x128xf32, #tpu.memory_space<vmem>>, vector<1x128xf32>
    %cst = arith.constant dense<0.000000e+00> : vector<16x128xf32>
    %4 = tpu.matmul %1, %2, %cst {dimension_numbers = #tpu.dot_dimension_numbers<[1], [0], [0], [1], [0, 0, 1, 1], [], []>} : vector<16x32xbf16>, vector<32x128xbf16>, vector<16x128xf32> -> vector<16x128xf32>
    %5 = vector.broadcast %3 : vector<1x128xf32> to vector<16x128xf32>
    %6 = arith.addf %4, %5 : vector<16x128xf32>
    %cst_5 = arith.constant 0.000000e+00 : f32
    %7 = vector.broadcast %cst_5 : f32 to vector<16x128xf32>
    %8 = arith.maximumf %6, %7 : vector<16x128xf32>
    %9 = arith.truncf %8 : vector<16x128xf32> to vector<16x128xbf16>
    %c0_6 = arith.constant 0 : index
    %c0_7 = arith.constant 0 : index
    %10 = vector.load %arg4[%c0_6, %c0_7] : memref<128x128xbf16, #tpu.memory_space<vmem>>, vector<128x128xbf16>
    %c0_8 = arith.constant 0 : index
    %c0_9 = arith.constant 0 : index
    %11 = vector.load %arg5[%c0_8, %c0_9] : memref<1x128xf32, #tpu.memory_space<vmem>>, vector<1x128xf32>
    %cst_10 = arith.constant dense<0.000000e+00> : vector<16x128xf32>
    %12 = tpu.matmul %9, %10, %cst_10 {dimension_numbers = #tpu.dot_dimension_numbers<[1], [0], [0], [1], [0, 0, 1, 1], [], []>} : vector<16x128xbf16>, vector<128x128xbf16>, vector<16x128xf32> -> vector<16x128xf32>
    %13 = vector.broadcast %11 : vector<1x128xf32> to vector<16x128xf32>
    %14 = arith.addf %12, %13 : vector<16x128xf32>
    %cst_11 = arith.constant 0.000000e+00 : f32
    %15 = vector.broadcast %cst_11 : f32 to vector<16x128xf32>
    %16 = arith.maximumf %14, %15 : vector<16x128xf32>
    %17 = arith.truncf %16 : vector<16x128xf32> to vector<16x128xbf16>
    %c0_12 = arith.constant 0 : index
    %c0_13 = arith.constant 0 : index
    %18 = vector.load %arg6[%c0_12, %c0_13] : memref<128x128xbf16, #tpu.memory_space<vmem>>, vector<128x128xbf16>
    %c0_14 = arith.constant 0 : index
    %c0_15 = arith.constant 0 : index
    %19 = vector.load %arg7[%c0_14, %c0_15] : memref<1x128xf32, #tpu.memory_space<vmem>>, vector<1x128xf32>
    %cst_16 = arith.constant dense<0.000000e+00> : vector<16x128xf32>
    %20 = tpu.matmul %17, %18, %cst_16 {dimension_numbers = #tpu.dot_dimension_numbers<[1], [0], [0], [1], [0, 0, 1, 1], [], []>} : vector<16x128xbf16>, vector<128x128xbf16>, vector<16x128xf32> -> vector<16x128xf32>
    %21 = vector.broadcast %19 : vector<1x128xf32> to vector<16x128xf32>
    %22 = arith.addf %20, %21 : vector<16x128xf32>
    %c0_17 = arith.constant 0 : index
    %c0_18 = arith.constant 0 : index
    %23 = vector.load %arg8[%c0_17, %c0_18] : memref<16x128xf32, #tpu.memory_space<vmem>>, vector<16x128xf32>
    tpu.vector_store %arg8[%c0_17, %c0_18], %22 {strides = array<i32>} : memref<16x128xf32, #tpu.memory_space<vmem>>, vector<16x128xf32>,
    return
  }
  func.func @transform_0(%arg0: i32) -> (i32, i32) {
    %c0_i32 = arith.constant 0 : i32
    %c0_i32_0 = arith.constant 0 : i32
    return %arg0, %c0_i32 : i32, i32
  }
  func.func @transform_1(%arg0: i32) -> (i32, i32) {
    %c0_i32 = arith.constant 0 : i32
    %c0_i32_0 = arith.constant 0 : i32
    %c0_i32_1 = arith.constant 0 : i32
    return %c0_i32, %c0_i32_0 : i32, i32
  }
  func.func @transform_2(%arg0: i32) -> (i32, i32) {
    %c0_i32 = arith.constant 0 : i32
    %c0_i32_0 = arith.constant 0 : i32
    %c0_i32_1 = arith.constant 0 : i32
    return %c0_i32, %c0_i32_0 : i32, i32
  }
  func.func @transform_3(%arg0: i32) -> (i32, i32) {
    %c0_i32 = arith.constant 0 : i32
    %c0_i32_0 = arith.constant 0 : i32
    %c0_i32_1 = arith.constant 0 : i32
    return %c0_i32, %c0_i32_0 : i32, i32
  }
  func.func @transform_4(%arg0: i32) -> (i32, i32) {
    %c0_i32 = arith.constant 0 : i32
    %c0_i32_0 = arith.constant 0 : i32
    %c0_i32_1 = arith.constant 0 : i32
    return %c0_i32, %c0_i32_0 : i32, i32
  }
  func.func @transform_5(%arg0: i32) -> (i32, i32) {
    %c0_i32 = arith.constant 0 : i32
    %c0_i32_0 = arith.constant 0 : i32
    %c0_i32_1 = arith.constant 0 : i32
    return %c0_i32, %c0_i32_0 : i32, i32
  }
  func.func @transform_6(%arg0: i32) -> (i32, i32) {
    %c0_i32 = arith.constant 0 : i32
    %c0_i32_0 = arith.constant 0 : i32
    %c0_i32_1 = arith.constant 0 : i32
    return %c0_i32, %c0_i32_0 : i32, i32
  }
  func.func @transform_7(%arg0: i32) -> (i32, i32) {
    %c0_i32 = arith.constant 0 : i32
    %c0_i32_0 = arith.constant 0 : i32
    return %arg0, %c0_i32 : i32, i32
  }
}

</mosaic_0001>

<bundles_post_ra>
// kernel: tpu_custom_call.1
= control target key start
LH: loop header
LB: loop body
LE: loop exit
PB: predicated region body
PF: predicated region fallthrough
CT: control target
= control target key end

     0   :  { %12 = vsyncpa [#allocation3], 0  ;;  %s747_s0 = inlined_call_operand.hbm [shape: f32[16,32], index: 0, kind: input, shape index: {}]   ;;  %s748_s1 = inlined_call_operand.hbm [shape: bf16[32,128], index: 1, kind: input, shape index: {}]   ;;  %s749_s2 = inlined_call_operand.vmem [shape: f32[1,128], index: 2, kind: input, shape index: {}]   ;;  %s750_s3 = inlined_call_operand.hbm [shape: bf16[128,128], index: 3, kind: input, shape index: {}]   ;;  %s751_s4 = inlined_call_operand.vmem [shape: f32[1,128], index: 4, kind: input, shape index: {}]   ;;  %s752_s5 = inlined_call_operand.hbm [shape: bf16[128,128], index: 5, kind: input, shape index: {}]   ;;  %s753_s6 = inlined_call_operand.vmem [shape: f32[1,128], index: 6, kind: input, shape index: {}]   ;;  %s754_s7 = inlined_call_operand.hbm [shape: f32[16,128], index: 7, kind: output, shape index: {}]  }
   0x1   :  { %13 = vsyncpa [#allocation6], 0 }
   0x2   :  { %14 = vsyncpa [#allocation9], 0 }
   0x3   :  { %15 = vsyncpa [#allocation4], 0  ;;  %s633_s24 = smov [#allocation5]  }
   0x4   :  { %s33_s25 = sshll.u32 %s633_s24, 4  ;;  %s34_s25 = int_to_ptr.vmem [resolvable:$true] %s33_s25 }
   0x5   :  { %s533_s26 = scalar_lea.vmem %s34_s25, 256  ;;  %p538_p1 = scmp.lt.s32.totalorder %s34_s25, %s34_s25 }
   0x6   :  { %p534_p0 = scmp.ne.s32.totalorder %s34_s25, %s533_s26  ;;  %p539_p2 = scmp.lt.s32.totalorder %s533_s26, %s533_s26 }
   0x8   :  { %p540_p3 = por %p539_p2, %p538_p1 }
   0xa   :  { %p541_p4 = pnand %p540_p3, %p534_p0 }
   0xc   :  { %544 = shalt.err (!%p541_p4)
}
   0xd   :  { %s634_s27 = smov 64   ;;  %s635_s28 = smov 4  }
   0xe   :  { %39 = dma.hbm_to_vmem [thread:$0]  %s748_s1, 256, %s34_s25, [#allocation6], %s634_s27, %s634_s27, %s635_s28  }
   0xf   :  { %s636_s8 = smov [#allocation2]  }
  0x10   :  { %s21_s9 = sshll.u32 %s636_s8, 4  ;;  %s22_s9 = int_to_ptr.vmem [resolvable:$true] %s21_s9 }
  0x11   :  { %s553_s10 = scalar_lea.vmem %s22_s9, 256  ;;  %p558_p6 = scmp.lt.s32.totalorder %s22_s9, %s22_s9 }
  0x12   :  { %p554_p5 = scmp.ne.s32.totalorder %s22_s9, %s553_s10  ;;  %p559_p7 = scmp.lt.s32.totalorder %s553_s10, %s553_s10 }
  0x14   :  { %p560_p8 = por %p559_p7, %p558_p6 }
  0x16   :  { %p561_p9 = pnand %p560_p8, %p554_p5 }
  0x18   :  { %564 = shalt.err (!%p561_p9)
}
  0x19   :  { %s637_s11 = smov 128   ;;  %s638_s12 = smov 8  }
  0x1a   :  { %27 = dma.hbm_to_vmem [thread:$0]  %s747_s0, 256, %s22_s9, [#allocation3], %s637_s11, %s637_s11, %s638_s12  }
  0x1b   :  { %s639_s1 = smov [#allocation7]   ;;  %s640_s16 = smov [#allocation8]  }
  0x1c   :  { %s47_s15 = sshll.u32 %s639_s1, 4  ;;  %s61_s17 = sshll.u32 %s640_s16, 4  ;;  %s48_s15 = int_to_ptr.vmem [resolvable:$true] %s47_s15  ;;  %s62_s17 = int_to_ptr.vmem [resolvable:$true] %s61_s17 }
  0x1d   :  { %s573_s18 = scalar_lea.vmem %s48_s15, 1024  ;;  %p578_p11 = scmp.lt.s32.totalorder %s48_s15, %s48_s15 }
  0x1e   :  { %p574_p10 = scmp.ne.s32.totalorder %s48_s15, %s573_s18  ;;  %p579_p12 = scmp.lt.s32.totalorder %s573_s18, %s573_s18 }
  0x20   :  { %p580_p13 = por %p579_p12, %p578_p11 }
  0x22   :  { %p581_p0 = pnand %p580_p13, %p574_p10 }
  0x24   :  { %584 = shalt.err (!%p581_p0)
}
  0x25   :  { %53 = dma.hbm_to_vmem [thread:$0]  %s750_s3, 1024, %s48_s15, [#allocation6], %s634_s27, %s634_s27, %s635_s28  }
  0x26   :  { %s593_s0 = scalar_lea.vmem %s62_s17, 1024  ;;  %p598_p2 = scmp.lt.s32.totalorder %s62_s17, %s62_s17 }
  0x27   :  { %p594_p1 = scmp.ne.s32.totalorder %s62_s17, %s593_s0  ;;  %p599_p3 = scmp.lt.s32.totalorder %s593_s0, %s593_s0 }
  0x29   :  { %p600_p4 = por %p599_p3, %p598_p2 }
  0x2b   :  { %p601_p5 = pnand %p600_p4, %p594_p1 }
  0x2d   :  { %604 = shalt.err (!%p601_p5)
}
  0x2e   :  { %67 = dma.hbm_to_vmem [thread:$0]  %s752_s5, 1024, %s62_s17, [#allocation9], %s634_s27, %s634_s27, %s635_s28  }
  0x2f   :  { %625 = dma.done.wait [#allocation3], 256  }
  0x30   :  { %626 = vsyncadd [#allocation3], 4294967040 }
  0x31   :  { %627 = dma.done.wait [#allocation6], 1280  }
  0x32   :  { %628 = vsyncadd [#allocation6], 4294966016 }
  0x33   :  { %629 = dma.done.wait [#allocation9], 1024  }
  0x34   :  { %630 = vsyncadd [#allocation9], 4294966272  ;;  %v641_v0 = vmov 0.0   ;;  %vm642_vm0 = vmmov 0   ;;  %v507_v1 = vld [vmem:[#allocation5 + $0x8] sm:$0xff]   ;;  %v508_v2 = vld [vmem:[#allocation5] sm:$0xff]  }
  0x35   :  { %448 = vmatprep.subr.bf16.mxu0 %v641_v0  ;;  %452 = vmatprep.mubr.msk.bf16.mxu0 %vm642_vm0, %v641_v0  ;;  %v83_v3 = vld [vmem:[#allocation2] sm:$0xff]  ;;  %v84_v4 = vld [vmem:[#allocation2 + $0x8] sm:$0xff]  ;;  %v509_v5 = vld [vmem:[#allocation7 + $0x38] sm:$0xff]   ;;  %vm109_vm1 = vcmask 261120   ;;  %s643_s26 = smov [#allocation10]  }
  0x36   :  { %456 = vmatprep.subr.bf16.mxu1 %v641_v0  ;;  %472 = vmatprep.mubr.msk.bf16.mxu1 %vm642_vm0, %v641_v0  ;;  %v85_v6 = vpack.c.bf16 %v84_v4, %v83_v3  ;;  %v510_v7 = vld [vmem:[#allocation7 + $0x30] sm:$0xff]   ;;  %v511_v8 = vld [vmem:[#allocation7 + $0x28] sm:$0xff]   ;;  %v512_v9 = vld [vmem:[#allocation7 + $0x20] sm:$0xff]   ;;  %s391_s27 = sshll.u32 %s643_s26, 4  ;;  %s392_s27 = int_to_ptr.vmem [resolvable:$true] %s391_s27 }
  0x37   :  { %449 = vmatpush3.bf16.msra.mxu0 %v507_v1  ;;  %457 = vmatpush3.bf16.msra.mxu1 %v509_v5  ;;  %v513_v10 = vld [vmem:[#allocation7 + $0x18] sm:$0xff]   ;;  %v514_v11 = vld [vmem:[#allocation7 + $0x10] sm:$0xff]   ;;  %v515_v12 = vld [vmem:[#allocation7 + $0x8] sm:$0xff]   ;;  %p610_p7 = scmp.lt.s32.totalorder %s392_s27, %s392_s27 }
  0x38   :  { %450 = vmatprep.subr.bf16.mxu0 %v641_v0  ;;  %458 = vmatprep.subr.bf16.mxu1 %v641_v0  ;;  %v516_v13 = vld [vmem:[#allocation7] sm:$0xff]   ;;  %v517_v14 = vld [vmem:[#allocation8 + $0x38] sm:$0xff]   ;;  %v518_v15 = vld [vmem:[#allocation8 + $0x30] sm:$0xff]  }
  0x39   :  { %v519_v16 = vld [vmem:[#allocation8 + $0x28] sm:$0xff]   ;;  %v520_v17 = vld [vmem:[#allocation8 + $0x20] sm:$0xff]   ;;  %v521_v18 = vld [vmem:[#allocation8 + $0x18] sm:$0xff]  }
  0x3a   :  { %v405_v19 = vld [vmem:[%s749_s2] ss:$0 sm:$0xff]  ;;  %v522_v29 = vld [vmem:[#allocation8 + $0x10] sm:$0xff]   ;;  %v523_v30 = vld [vmem:[#allocation8 + $0x8] sm:$0xff]  }
  0x3b   :  { %451 = vmatpush3.bf16.msra.mxu0 %v508_v2  ;;  %459 = vmatpush3.bf16.msra.mxu1 %v510_v7  ;;  %v524_v31 = vld [vmem:[#allocation8] sm:$0xff]  }
  0x3c   :  { %476 = vmatprep.subr.bf16.mxu0 %v641_v0  ;;  %460 = vmatprep.subr.bf16.mxu1 %v641_v0  ;;  %v409_v32 = vld [vmem:[%s751_s4] ss:$0 sm:$0xff]  ;;  %s605_s4 = scalar_lea.vmem %s392_s27, 256 }
  0x3d   :  { %v418_v42 = vld [vmem:[%s753_s6] ss:$0 sm:$0xff]  ;;  %p606_p6 = scmp.ne.s32.totalorder %s392_s27, %s605_s4  ;;  %p611_p8 = scmp.lt.s32.totalorder %s605_s4, %s605_s4 }
  0x3e   :  { %453 = vmatmul.mubr.msk.bf16.vlgmr.msra.gmra.mxu0 %vm109_vm1, %v85_v6 }
  0x3f   :  { %492 = vmatprep.mubr.msk.bf16.mxu0 %vm642_vm0, %v641_v0  ;;  %461 = vmatpush3.bf16.msra.mxu1 %v511_v8  ;;  %p612_p9 = por %p611_p8, %p610_p7 }
  0x40   :  { %462 = vmatprep.subr.bf16.mxu1 %v641_v0  ;;  %477 = vmatpush3.bf16.msra.mxu0 %v517_v14 }
  0x41   :  { %478 = vmatprep.subr.bf16.mxu0 %v641_v0  ;;  %p613_p10 = pnand %p612_p9, %p606_p6 }
  0x43   :  { %463 = vmatpush3.bf16.msra.mxu1 %v512_v9 }
  0x44   :  { %464 = vmatprep.subr.bf16.mxu1 %v641_v0  ;;  %479 = vmatpush3.bf16.msra.mxu0 %v518_v15 }
  0x45   :  { %480 = vmatprep.subr.bf16.mxu0 %v641_v0 }
  0x47   :  { %465 = vmatpush3.bf16.msra.mxu1 %v513_v10 }
  0x48   :  { %466 = vmatprep.subr.bf16.mxu1 %v641_v0  ;;  %481 = vmatpush3.bf16.msra.mxu0 %v519_v16 }
  0x49   :  { %482 = vmatprep.subr.bf16.mxu0 %v641_v0 }
  0x4b   :  { %467 = vmatpush3.bf16.msra.mxu1 %v514_v11 }
  0x4c   :  { %468 = vmatprep.subr.bf16.mxu1 %v641_v0  ;;  %483 = vmatpush3.bf16.msra.mxu0 %v520_v17 }
  0x4d   :  { %484 = vmatprep.subr.bf16.mxu0 %v641_v0 }
  0x4f   :  { %469 = vmatpush3.bf16.msra.mxu1 %v515_v12 }
  0x50   :  { %470 = vmatprep.subr.bf16.mxu1 %v641_v0  ;;  %485 = vmatpush3.bf16.msra.mxu0 %v521_v18 }
  0x51   :  { %486 = vmatprep.subr.bf16.mxu0 %v641_v0 }
  0x53   :  { %471 = vmatpush3.bf16.msra.mxu1 %v516_v13 }
  0x54   :  { %487 = vmatpush3.bf16.msra.mxu0 %v522_v29 }
  0x55   :  { %488 = vmatprep.subr.bf16.mxu0 %v641_v0 }
  0x58   :  { %489 = vmatpush3.bf16.msra.mxu0 %v523_v30 }
  0x59   :  { %490 = vmatprep.subr.bf16.mxu0 %v641_v0 }
  0x5c   :  { %491 = vmatpush3.bf16.msra.mxu0 %v524_v31 }
  0xfe   :  { %v147_v20 = vpop.f32.mrf.mxu0 }
  0xff   :  { %v148_v22 = vadd.f32 %v405_v19, %v147_v20 }
 0x100   :  { %v454_v21 = vpop.f32.mrf.mxu0 }
 0x101   :  { %v154_v26 = vmax.f32 %v148_v22, 0.0 }
 0x102   :  { %v150_v23 = vpop.f32.mrf.mxu0 }
 0x103   :  { %v151_v24 = vadd.f32 %v405_v19, %v150_v23 }
 0x104   :  { %v455_v25 = vpop.f32.mrf.mxu0 }
 0x105   :  { %v155_v27 = vmax.f32 %v151_v24, 0.0 }
 0x107   :  { %v156_v28 = vpack.c.bf16 %v155_v27, %v154_v26 }
 0x109   :  { %473 = vmatmul.mubr.bf16.vlgmr.msra.gmra.mxu1 %v156_v28 }
 0x1c9   :  { %v262_v33 = vpop.f32.mrf.mxu1 }
 0x1ca   :  { %v263_v35 = vadd.f32 %v409_v32, %v262_v33 }
 0x1cb   :  { %v474_v34 = vpop.f32.mrf.mxu1 }
 0x1cc   :  { %v269_v39 = vmax.f32 %v263_v35, 0.0 }
 0x1cd   :  { %v265_v36 = vpop.f32.mrf.mxu1 }
 0x1ce   :  { %v266_v37 = vadd.f32 %v409_v32, %v265_v36 }
 0x1cf   :  { %v475_v38 = vpop.f32.mrf.mxu1 }
 0x1d0   :  { %v270_v40 = vmax.f32 %v266_v37, 0.0 }
 0x1d2   :  { %v271_v41 = vpack.c.bf16 %v270_v40, %v269_v39 }
 0x1d4   :  { %493 = vmatmul.mubr.bf16.vlgmr.msra.gmra.mxu0 %v271_v41 }
 0x294   :  { %v377_v43 = vpop.f32.mrf.mxu0 }
 0x295   :  { %v378_v44 = vadd.f32 %v418_v42, %v377_v43 }
 0x296   :  { %v494_v45 = vpop.f32.mrf.mxu0 }
 0x297   :  { %384 = vst [vmem:[#allocation10] sm:$0xff] %v378_v44 }
 0x298   :  { %v380_v46 = vpop.f32.mrf.mxu0 }
 0x299   :  { %v381_v47 = vadd.f32 %v418_v42, %v380_v46 }
 0x29a   :  { %v495_v48 = vpop.f32.mrf.mxu0 }
 0x29b   :  { %385 = vst [vmem:[#allocation10 + $0x8] sm:$0xff] %v381_v47 }
 0x29c   :  { %616 = shalt.err (!%p613_p10)
}
 0x29d   :  { %397 = dma.vmem_to_hbm [thread:$0]  %s392_s27, 256, %s754_s7, [#allocation4], %s637_s11, %s637_s11, %s638_s12  }
 0x29e   :  { %631 = dma.done.wait [#allocation4], 256  }
 0x29f   :  { %632 = vsyncadd [#allocation4], 4294967040 }
 0x2a0   :  { %401 = vsyncpa [#allocation3], 1 }
 0x2a1   :  { %402 = vsyncpa [#allocation6], 1 }
 0x2a2   :  { %403 = vsyncpa [#allocation9], 1 }
 0x2a3   :  { %404 = vsyncpa [#allocation4], 1 }

// kernel: tpu_custom_call.1
= control target key start
LH: loop header
LB: loop body
LE: loop exit
PB: predicated region body
PF: predicated region fallthrough
CT: control target
= control target key end

     0   :  { %12 = vsyncpa [#allocation3], 0  ;;  %s747_s0 = inlined_call_operand.hbm [shape: f32[16,32], index: 0, kind: input, shape index: {}]   ;;  %s748_s1 = inlined_call_operand.hbm [shape: bf16[32,128], index: 1, kind: input, shape index: {}]   ;;  %s749_s2 = inlined_call_operand.vmem [shape: f32[1,128], index: 2, kind: input, shape index: {}]   ;;  %s750_s3 = inlined_call_operand.hbm [shape: bf16[128,128], index: 3, kind: input, shape index: {}]   ;;  %s751_s4 = inlined_call_operand.vmem [shape: f32[1,128], index: 4, kind: input, shape index: {}]   ;;  %s752_s5 = inlined_call_operand.hbm [shape: bf16[128,128], index: 5, kind: input, shape index: {}]   ;;  %s753_s6 = inlined_call_operand.vmem [shape: f32[1,128], index: 6, kind: input, shape index: {}]   ;;  %s754_s7 = inlined_call_operand.hbm [shape: f32[16,128], index: 7, kind: output, shape index: {}]  }
   0x1   :  { %13 = vsyncpa [#allocation6], 0 }
   0x2   :  { %14 = vsyncpa [#allocation9], 0 }
   0x3   :  { %15 = vsyncpa [#allocation4], 0  ;;  %s633_s24 = smov [#allocation5]  }
   0x4   :  { %s33_s25 = sshll.u32 %s633_s24, 4  ;;  %s34_s25 = int_to_ptr.vmem [resolvable:$true] %s33_s25 }
   0x5   :  { %s533_s26 = scalar_lea.vmem %s34_s25, 256  ;;  %p538_p1 = scmp.lt.s32.totalorder %s34_s25, %s34_s25 }
   0x6   :  { %p534_p0 = scmp.ne.s32.totalorder %s34_s25, %s533_s26  ;;  %p539_p2 = scmp.lt.s32.totalorder %s533_s26, %s533_s26 }
   0x8   :  { %p540_p3 = por %p539_p2, %p538_p1 }
   0xa   :  { %p541_p4 = pnand %p540_p3, %p534_p0 }
   0xc   :  { %544 = shalt.err (!%p541_p4)
}
   0xd   :  { %s634_s27 = smov 64   ;;  %s635_s28 = smov 4  }
   0xe   :  { %39 = dma.hbm_to_vmem [thread:$0]  %s748_s1, 256, %s34_s25, [#allocation6], %s634_s27, %s634_s27, %s635_s28  }
   0xf   :  { %s636_s8 = smov [#allocation2]  }
  0x10   :  { %s21_s9 = sshll.u32 %s636_s8, 4  ;;  %s22_s9 = int_to_ptr.vmem [resolvable:$true] %s21_s9 }
  0x11   :  { %s553_s10 = scalar_lea.vmem %s22_s9, 256  ;;  %p558_p6 = scmp.lt.s32.totalorder %s22_s9, %s22_s9 }
  0x12   :  { %p554_p5 = scmp.ne.s32.totalorder %s22_s9, %s553_s10  ;;  %p559_p7 = scmp.lt.s32.totalorder %s553_s10, %s553_s10 }
  0x14   :  { %p560_p8 = por %p559_p7, %p558_p6 }
  0x16   :  { %p561_p9 = pnand %p560_p8, %p554_p5 }
  0x18   :  { %564 = shalt.err (!%p561_p9)
}
  0x19   :  { %s637_s11 = smov 128   ;;  %s638_s12 = smov 8  }
  0x1a   :  { %27 = dma.hbm_to_vmem [thread:$0]  %s747_s0, 256, %s22_s9, [#allocation3], %s637_s11, %s637_s11, %s638_s12  }
  0x1b   :  { %s639_s1 = smov [#allocation7]   ;;  %s640_s16 = smov [#allocation8]  }
  0x1c   :  { %s47_s15 = sshll.u32 %s639_s1, 4  ;;  %s61_s17 = sshll.u32 %s640_s16, 4  ;;  %s48_s15 = int_to_ptr.vmem [resolvable:$true] %s47_s15  ;;  %s62_s17 = int_to_ptr.vmem [resolvable:$true] %s61_s17 }
  0x1d   :  { %s573_s18 = scalar_lea.vmem %s48_s15, 1024  ;;  %p578_p11 = scmp.lt.s32.totalorder %s48_s15, %s48_s15 }
  0x1e   :  { %p574_p10 = scmp.ne.s32.totalorder %s48_s15, %s573_s18  ;;  %p579_p12 = scmp.lt.s32.totalorder %s573_s18, %s573_s18 }
  0x20   :  { %p580_p13 = por %p579_p12, %p578_p11 }
  0x22   :  { %p581_p0 = pnand %p580_p13, %p574_p10 }
  0x24   :  { %584 = shalt.err (!%p581_p0)
}
  0x25   :  { %53 = dma.hbm_to_vmem [thread:$0]  %s750_s3, 1024, %s48_s15, [#allocation6], %s634_s27, %s634_s27, %s635_s28  }
  0x26   :  { %s593_s0 = scalar_lea.vmem %s62_s17, 1024  ;;  %p598_p2 = scmp.lt.s32.totalorder %s62_s17, %s62_s17 }
  0x27   :  { %p594_p1 = scmp.ne.s32.totalorder %s62_s17, %s593_s0  ;;  %p599_p3 = scmp.lt.s32.totalorder %s593_s0, %s593_s0 }
  0x29   :  { %p600_p4 = por %p599_p3, %p598_p2 }
  0x2b   :  { %p601_p5 = pnand %p600_p4, %p594_p1 }
  0x2d   :  { %604 = shalt.err (!%p601_p5)
}
  0x2e   :  { %67 = dma.hbm_to_vmem [thread:$0]  %s752_s5, 1024, %s62_s17, [#allocation9], %s634_s27, %s634_s27, %s635_s28  }
  0x2f   :  { %625 = dma.done.wait [#allocation3], 256  }
  0x30   :  { %626 = vsyncadd [#allocation3], 4294967040 }
  0x31   :  { %627 = dma.done.wait [#allocation6], 1280  }
  0x32   :  { %628 = vsyncadd [#allocation6], 4294966016 }
  0x33   :  { %629 = dma.done.wait [#allocation9], 1024  }
  0x34   :  { %630 = vsyncadd [#allocation9], 4294966272  ;;  %v641_v0 = vmov 0.0   ;;  %vm642_vm0 = vmmov 0   ;;  %v507_v1 = vld [vmem:[#allocation5 + $0x8] sm:$0xff]   ;;  %v508_v2 = vld [vmem:[#allocation5] sm:$0xff]  }
  0x35   :  { %448 = vmatprep.subr.bf16.mxu0 %v641_v0  ;;  %452 = vmatprep.mubr.msk.bf16.mxu0 %vm642_vm0, %v641_v0  ;;  %v83_v3 = vld [vmem:[#allocation2] sm:$0xff]  ;;  %v84_v4 = vld [vmem:[#allocation2 + $0x8] sm:$0xff]  ;;  %v509_v5 = vld [vmem:[#allocation7 + $0x38] sm:$0xff]   ;;  %vm109_vm1 = vcmask 261120   ;;  %s643_s26 = smov [#allocation10]  }
  0x36   :  { %456 = vmatprep.subr.bf16.mxu1 %v641_v0  ;;  %472 = vmatprep.mubr.msk.bf16.mxu1 %vm642_vm0, %v641_v0  ;;  %v85_v6 = vpack.c.bf16 %v84_v4, %v83_v3  ;;  %v510_v7 = vld [vmem:[#allocation7 + $0x30] sm:$0xff]   ;;  %v511_v8 = vld [vmem:[#allocation7 + $0x28] sm:$0xff]   ;;  %v512_v9 = vld [vmem:[#allocation7 + $0x20] sm:$0xff]   ;;  %s391_s27 = sshll.u32 %s643_s26, 4  ;;  %s392_s27 = int_to_ptr.vmem [resolvable:$true] %s391_s27 }
  0x37   :  { %449 = vmatpush3.bf16.msra.mxu0 %v507_v1  ;;  %457 = vmatpush3.bf16.msra.mxu1 %v509_v5  ;;  %v513_v10 = vld [vmem:[#allocation7 + $0x18] sm:$0xff]   ;;  %v514_v11 = vld [vmem:[#allocation7 + $0x10] sm:$0xff]   ;;  %v515_v12 = vld [vmem:[#allocation7 + $0x8] sm:$0xff]   ;;  %p610_p7 = scmp.lt.s32.totalorder %s392_s27, %s392_s27 }
  0x38   :  { %450 = vmatprep.subr.bf16.mxu0 %v641_v0  ;;  %458 = vmatprep.subr.bf16.mxu1 %v641_v0  ;;  %v516_v13 = vld [vmem:[#allocation7] sm:$0xff]   ;;  %v517_v14 = vld [vmem:[#allocation8 + $0x38] sm:$0xff]   ;;  %v518_v15 = vld [vmem:[#allocation8 + $0x30] sm:$0xff]  }
  0x39   :  { %v519_v16 = vld [vmem:[#allocation8 + $0x28] sm:$0xff]   ;;  %v520_v17 = vld [vmem:[#allocation8 + $0x20] sm:$0xff]   ;;  %v521_v18 = vld [vmem:[#allocation8 + $0x18] sm:$0xff]  }
  0x3a   :  { %v405_v19 = vld [vmem:[%s749_s2] ss:$0 sm:$0xff]  ;;  %v522_v29 = vld [vmem:[#allocation8 + $0x10] sm:$0xff]   ;;  %v523_v30 = vld [vmem:[#allocation8 + $0x8] sm:$0xff]  }
  0x3b   :  { %451 = vmatpush3.bf16.msra.mxu0 %v508_v2  ;;  %459 = vmatpush3.bf16.msra.mxu1 %v510_v7  ;;  %v524_v31 = vld [vmem:[#allocation8] sm:$0xff]  }
  0x3c   :  { %476 = vmatprep.subr.bf16.mxu0 %v641_v0  ;;  %460 = vmatprep.subr.bf16.mxu1 %v641_v0  ;;  %v409_v32 = vld [vmem:[%s751_s4] ss:$0 sm:$0xff]  ;;  %s605_s4 = scalar_lea.vmem %s392_s27, 256 }
  0x3d   :  { %v418_v42 = vld [vmem:[%s753_s6] ss:$0 sm:$0xff]  ;;  %p606_p6 = scmp.ne.s32.totalorder %s392_s27, %s605_s4  ;;  %p611_p8 = scmp.lt.s32.totalorder %s605_s4, %s605_s4 }
  0x3e   :  { %453 = vmatmul.mubr.msk.bf16.vlgmr.msra.gmra.mxu0 %vm109_vm1, %v85_v6 }
  0x3f   :  { %492 = vmatprep.mubr.msk.bf16.mxu0 %vm642_vm0, %v641_v0  ;;  %461 = vmatpush3.bf16.msra.mxu1 %v511_v8  ;;  %p612_p9 = por %p611_p8, %p610_p7 }
  0x40   :  { %462 = vmatprep.subr.bf16.mxu1 %v641_v0  ;;  %477 = vmatpush3.bf16.msra.mxu0 %v517_v14 }
  0x41   :  { %478 = vmatprep.subr.bf16.mxu0 %v641_v0  ;;  %p613_p10 = pnand %p612_p9, %p606_p6 }
  0x43   :  { %463 = vmatpush3.bf16.msra.mxu1 %v512_v9 }
  0x44   :  { %464 = vmatprep.subr.bf16.mxu1 %v641_v0  ;;  %479 = vmatpush3.bf16.msra.mxu0 %v518_v15 }
  0x45   :  { %480 = vmatprep.subr.bf16.mxu0 %v641_v0 }
  0x47   :  { %465 = vmatpush3.bf16.msra.mxu1 %v513_v10 }
  0x48   :  { %466 = vmatprep.subr.bf16.mxu1 %v641_v0  ;;  %481 = vmatpush3.bf16.msra.mxu0 %v519_v16 }
  0x49   :  { %482 = vmatprep.subr.bf16.mxu0 %v641_v0 }
  0x4b   :  { %467 = vmatpush3.bf16.msra.mxu1 %v514_v11 }
  0x4c   :  { %468 = vmatprep.subr.bf16.mxu1 %v641_v0  ;;  %483 = vmatpush3.bf16.msra.mxu0 %v520_v17 }
  0x4d   :  { %484 = vmatprep.subr.bf16.mxu0 %v641_v0 }
  0x4f   :  { %469 = vmatpush3.bf16.msra.mxu1 %v515_v12 }
  0x50   :  { %470 = vmatprep.subr.bf16.mxu1 %v641_v0  ;;  %485 = vmatpush3.bf16.msra.mxu0 %v521_v18 }
  0x51   :  { %486 = vmatprep.subr.bf16.mxu0 %v641_v0 }
  0x53   :  { %471 = vmatpush3.bf16.msra.mxu1 %v516_v13 }
  0x54   :  { %487 = vmatpush3.bf16.msra.mxu0 %v522_v29 }
  0x55   :  { %488 = vmatprep.subr.bf16.mxu0 %v641_v0 }
  0x58   :  { %489 = vmatpush3.bf16.msra.mxu0 %v523_v30 }
  0x59   :  { %490 = vmatprep.subr.bf16.mxu0 %v641_v0 }
  0x5c   :  { %491 = vmatpush3.bf16.msra.mxu0 %v524_v31 }
  0xfe   :  { %v147_v20 = vpop.f32.mrf.mxu0 }
  0xff   :  { %v148_v22 = vadd.f32 %v405_v19, %v147_v20 }
 0x100   :  { %v454_v21 = vpop.f32.mrf.mxu0 }
 0x101   :  { %v154_v26 = vmax.f32 %v148_v22, 0.0 }
 0x102   :  { %v150_v23 = vpop.f32.mrf.mxu0 }
 0x103   :  { %v151_v24 = vadd.f32 %v405_v19, %v150_v23 }
 0x104   :  { %v455_v25 = vpop.f32.mrf.mxu0 }
 0x105   :  { %v155_v27 = vmax.f32 %v151_v24, 0.0 }
 0x107   :  { %v156_v28 = vpack.c.bf16 %v155_v27, %v154_v26 }
 0x109   :  { %473 = vmatmul.mubr.bf16.vlgmr.msra.gmra.mxu1 %v156_v28 }
 0x1c9   :  { %v262_v33 = vpop.f32.mrf.mxu1 }
 0x1ca   :  { %v263_v35 = vadd.f32 %v409_v32, %v262_v33 }
 0x1cb   :  { %v474_v34 = vpop.f32.mrf.mxu1 }
 0x1cc   :  { %v269_v39 = vmax.f32 %v263_v35, 0.0 }
 0x1cd   :  { %v265_v36 = vpop.f32.mrf.mxu1 }
 0x1ce   :  { %v266_v37 = vadd.f32 %v409_v32, %v265_v36 }
 0x1cf   :  { %v475_v38 = vpop.f32.mrf.mxu1 }
 0x1d0   :  { %v270_v40 = vmax.f32 %v266_v37, 0.0 }
 0x1d2   :  { %v271_v41 = vpack.c.bf16 %v270_v40, %v269_v39 }
 0x1d4   :  { %493 = vmatmul.mubr.bf16.vlgmr.msra.gmra.mxu0 %v271_v41 }
 0x294   :  { %v377_v43 = vpop.f32.mrf.mxu0 }
 0x295   :  { %v378_v44 = vadd.f32 %v418_v42, %v377_v43 }
 0x296   :  { %v494_v45 = vpop.f32.mrf.mxu0 }
 0x297   :  { %384 = vst [vmem:[#allocation10] sm:$0xff] %v378_v44 }
 0x298   :  { %v380_v46 = vpop.f32.mrf.mxu0 }
 0x299   :  { %v381_v47 = vadd.f32 %v418_v42, %v380_v46 }
 0x29a   :  { %v495_v48 = vpop.f32.mrf.mxu0 }
 0x29b   :  { %385 = vst [vmem:[#allocation10 + $0x8] sm:$0xff] %v381_v47 }
 0x29c   :  { %616 = shalt.err (!%p613_p10)
}
 0x29d   :  { %397 = dma.vmem_to_hbm [thread:$0]  %s392_s27, 256, %s754_s7, [#allocation4], %s637_s11, %s637_s11, %s638_s12  }
 0x29e   :  { %631 = dma.done.wait [#allocation4], 256  }
 0x29f   :  { %632 = vsyncadd [#allocation4], 4294967040 }
 0x2a0   :  { %401 = vsyncpa [#allocation3], 1 }
 0x2a1   :  { %402 = vsyncpa [#allocation6], 1 }
 0x2a2   :  { %403 = vsyncpa [#allocation9], 1 }
 0x2a3   :  { %404 = vsyncpa [#allocation4], 1 }

</bundles_post_ra>
